<compile_context>
chip_gen: v5e
topology: v5e:2x2
jax: 0.10.0
libtpu: 0.0.40
codegen_flags: <defaults>
</compile_context>

<pallas_src>
import functools

import jax
import jax.numpy as jnp
from jax.experimental import pallas as pl
from jax.experimental.pallas import tpu as pltpu

EPS = 1e-5  # BatchNorm eps


def make_bands(t, ks, pad):
    # bands[k][s, t_out] = 1 iff s == t_out + k - pad   (encodes the zero padding)
    ti = jnp.arange(t).reshape(1, t, 1)
    to = jnp.arange(t).reshape(1, 1, t)
    kk = jnp.arange(ks).reshape(ks, 1, 1)
    return (ti == to + kk - pad).astype(jnp.float32)   # (KS, T, T)


# ---------------------------------------------------------------------------
# fused kernel: one grid step == one batch element, everything stays in VMEM
# ---------------------------------------------------------------------------
def tdfl_kernel(x_ref, pool_ref, expand_ref, g_w1t_ref, g_scale_ref, g_bias_ref,
                g_w2t_ref, bands_ref, l_w1_ref, l_scale_ref, l_bias_ref, l_w2_ref,
                out_ref, *, ks, pad, v):
    x = x_ref[0]                                   # (C, T*V) lane-dense slab
    c, tv = x.shape
    t = pool_ref.shape[1]
    c4 = l_w1_ref.shape[1]

    # ---- adaptive_avg_pool2d(x, (T, 1)) == mean over V, done as a tiny MXU
    #      matmul against a (TV, T) selector so no in-kernel relayout is needed.
    pooled = jnp.dot(x, pool_ref[...], preferred_element_type=jnp.float32)     # (C, T)

    # ---- G branch: Linear(T->2T) -> BN(eval) -> ReLU -> Linear(2T->KS) -> Softmax
    h = jnp.dot(pooled, g_w1t_ref[...], preferred_element_type=jnp.float32)    # (C, 2T)
    h = jnp.maximum(h * g_scale_ref[...] + g_bias_ref[...], 0.0)
    logits = jnp.dot(h, g_w2t_ref[...], preferred_element_type=jnp.float32)    # (C, KS)
    logits = logits - jnp.max(logits, axis=-1, keepdims=True)
    e = jnp.exp(logits)
    w = e / jnp.sum(e, axis=-1, keepdims=True)                                  # (C, KS)

    # ---- L branch: Conv1d(C->C/4,ks,pad) -> BN(eval) -> ReLU -> Conv1d(C/4->C,1)
    #      -> Sigmoid  (tiny: operates on pooled only, keep small banded matmuls)
    h2 = jnp.zeros((c4, t), jnp.float32)
    for kk in range(ks):
        ps = jnp.dot(pooled, bands_ref[kk], preferred_element_type=jnp.float32)  # (C, T)
        h2 = h2 + jnp.dot(l_w1_ref[kk], ps, preferred_element_type=jnp.float32)  # (C4, T)
    h2 = jnp.maximum(h2 * l_scale_ref[...] + l_bias_ref[...], 0.0)
    la = jax.nn.sigmoid(
        jnp.dot(l_w2_ref[...], h2, preferred_element_type=jnp.float32))          # (C, T)

    # ---- gate broadcast over V via (T, TV) selector matmul, then gated input ----
    gate = jnp.dot(la, expand_ref[...], preferred_element_type=jnp.float32)      # (C, TV)
    new_x = x * gate                                                             # (C, TV)

    # ---- main path: depthwise temporal conv with data-dependent per-channel
    #      kernel + residual.  Temporal shift == lane shift by d*V with zero fill.
    acc = x                                        # start from residual
    for kk in range(ks):
        d = (kk - pad) * v                         # static lane offset per tap
        if d == 0:
            tap = new_x
        elif abs(d) >= tv:
            tap = jnp.zeros_like(new_x)
        elif d > 0:
            tap = jnp.concatenate(
                [new_x[:, d:], jnp.zeros((c, d), jnp.float32)], axis=-1)
        else:
            m = -d
            tap = jnp.concatenate(
                [jnp.zeros((c, m), jnp.float32), new_x[:, :tv - m]], axis=-1)
        acc = acc + w[:, kk][:, None] * tap
    out_ref[0] = acc.astype(out_ref.dtype)


# ---------------------------------------------------------------------------
# wrapper
# ---------------------------------------------------------------------------
def tdfl_forward(x, params, *, kernel_size=3, stride=1, padding=1):
    assert stride == 1, "residual add requires stride == 1"
    n, c, t, v = x.shape
    c4, ks = c // 4, kernel_size
    pad_l = ks // 2
    tv = t * v

    # fold eval-mode BatchNorm into scale / bias
    g_scale = (params["g_gamma"] / jnp.sqrt(params["g_var"] + EPS)).reshape(1, 2 * t)
    g_bias = params["g_beta"].reshape(1, 2 * t) - params["g_mean"].reshape(1, 2 * t) * g_scale
    l_scale = (params["l_gamma"] / jnp.sqrt(params["l_var"] + EPS)).reshape(c4, 1)
    l_bias = params["l_beta"].reshape(c4, 1) - params["l_mean"].reshape(c4, 1) * l_scale

    bands = make_bands(t, ks, pad_l)                 # (KS, T, T), L branch only
    l_w1 = jnp.transpose(params["l_w1"], (2, 0, 1))  # (KS, C4, C)
    l_w2 = params["l_w2"][:, :, 0]                   # (C, C4)

    # selector matrices for the flattened (C, T*V) layout
    seg = jnp.arange(tv) // v                                                     # (TV,)
    pool_mat = (seg[:, None] == jnp.arange(t)[None, :]).astype(jnp.float32) / v   # (TV, T)
    expand_mat = (jnp.arange(t)[:, None] == seg[None, :]).astype(jnp.float32)     # (T, TV)

    x2 = x.reshape(n, c, tv)                         # free, contiguous reshape

    kernel = functools.partial(tdfl_kernel, ks=ks, pad=padding, v=v)

    out2 = pl.pallas_call(
        kernel,
        out_shape=jax.ShapeDtypeStruct((n, c, tv), jnp.float32),
        grid=(n,),
        in_specs=[
            pl.BlockSpec((1, c, tv), lambda i: (i, 0, 0)),        # x (flattened)
            pl.BlockSpec((tv, t), lambda i: (0, 0)),              # V-mean selector
            pl.BlockSpec((t, tv), lambda i: (0, 0)),              # V-broadcast selector
            pl.BlockSpec((t, 2 * t), lambda i: (0, 0)),           # g_w1^T
            pl.BlockSpec((1, 2 * t), lambda i: (0, 0)),           # folded BN scale
            pl.BlockSpec((1, 2 * t), lambda i: (0, 0)),           # folded BN bias
            pl.BlockSpec((2 * t, ks), lambda i: (0, 0)),          # g_w2^T
            pl.BlockSpec((ks, t, t), lambda i: (0, 0, 0)),        # L bands
            pl.BlockSpec((ks, c4, c), lambda i: (0, 0, 0)),       # l_w1
            pl.BlockSpec((c4, 1), lambda i: (0, 0)),              # folded BN scale
            pl.BlockSpec((c4, 1), lambda i: (0, 0)),              # folded BN bias
            pl.BlockSpec((c, c4), lambda i: (0, 0)),              # l_w2
        ],
        out_specs=pl.BlockSpec((1, c, tv), lambda i: (i, 0, 0)),
        compiler_params=pltpu.CompilerParams(dimension_semantics=("parallel",)),
    )(x2, pool_mat, expand_mat, params["g_w1"].T, g_scale, g_bias, params["g_w2"].T,
      bands, l_w1, l_scale, l_bias, l_w2)
    return out2.reshape(n, c, t, v)


# ---------------------------------------------------------------------------
# deterministic parameter init (shapes from TDFL.__init__), eval-mode BN stats
# ---------------------------------------------------------------------------
def init_params(key, c, t, ks):
    c4 = c // 4
    k = jax.random.split(key, 12)
    f = jnp.float32
    return {
        "g_w1": 0.2 * jax.random.normal(k[0], (2 * t, t), f),
        "g_w2": 0.2 * jax.random.normal(k[1], (ks, 2 * t), f),
        "g_gamma": 1.0 + 0.1 * jax.random.normal(k[2], (2 * t,), f),
        "g_beta": 0.1 * jax.random.normal(k[3], (2 * t,), f),
        "g_mean": 0.1 * jax.random.normal(k[4], (2 * t,), f),
        "g_var": 0.9 + 0.1 * jnp.abs(jax.random.normal(k[5], (2 * t,), f)),
        "l_w1": 0.2 * jax.random.normal(k[6], (c4, c, ks), f),
        "l_w2": 0.2 * jax.random.normal(k[7], (c, c4, 1), f),
        "l_gamma": 1.0 + 0.1 * jax.random.normal(k[8], (c4,), f),
        "l_beta": 0.1 * jax.random.normal(k[9], (c4,), f),
        "l_mean": 0.1 * jax.random.normal(k[10], (c4,), f),
        "l_var": 0.9 + 0.1 * jnp.abs(jax.random.normal(k[11], (c4,), f)),
    }


# ---------------------------------------------------------------------------
# pure-JAX reference mirroring the PyTorch forward (eval-mode BN)
# ---------------------------------------------------------------------------
def tdfl_reference(x, params, *, kernel_size=3, padding=1):
    n, c, t, v = x.shape
    ks, c4 = kernel_size, c // 4
    pooled = jnp.mean(x, axis=3)                                     # (N, C, T)
    flat = pooled.reshape(n * c, t)
    h = flat @ params["g_w1"].T
    h = (h - params["g_mean"]) / jnp.sqrt(params["g_var"] + EPS) * params["g_gamma"] + params["g_beta"]
    h = jnp.maximum(h, 0.0)
    ck = jax.nn.softmax(h @ params["g_w2"].T, axis=-1)               # (N*C, KS)

    pad2 = ks // 2
    pp = jnp.pad(pooled, ((0, 0), (0, 0), (pad2, pad2)))
    h2 = jnp.zeros((n, c4, t), jnp.float32)
    for kk in range(ks):
        h2 = h2 + jnp.einsum("oc,nct->not", params["l_w1"][:, :, kk], pp[:, :, kk:kk + t])
    h2 = ((h2 - params["l_mean"][None, :, None]) / jnp.sqrt(params["l_var"][None, :, None] + EPS)
          * params["l_gamma"][None, :, None] + params["l_beta"][None, :, None])
    h2 = jnp.maximum(h2, 0.0)
    la = jax.nn.sigmoid(jnp.einsum("oc,nct->not", params["l_w2"][:, :, 0], h2))   # (N, C, T)

    new_x = x * la[..., None]
    nxp = jnp.pad(new_x, ((0, 0), (0, 0), (padding, padding), (0, 0)))
    ckr = ck.reshape(n, c, ks)
    out = jnp.zeros_like(x)
    for kk in range(ks):
        out = out + ckr[:, :, kk][:, :, None, None] * nxp[:, :, kk:kk + t, :]
    return out + x


if __name__ == "__main__":
    n, c, t, v = 2, 8, 8, 16          # batch, channels, n_segment, joints (T*V = 128)
    key = jax.random.PRNGKey(0)
    kx, kp = jax.random.split(key)
    x = jax.random.normal(kx, (n, c, t, v), jnp.float32)
    params = init_params(kp, c, t, 3)

    y = tdfl_forward(x, params, kernel_size=3, stride=1, padding=1)
    y = jax.block_until_ready(y)

    y_ref = tdfl_reference(x, params, kernel_size=3, padding=1)
    assert y.shape == x.shape
    err = float(jnp.max(jnp.abs(y - y_ref)))
    if err < 2e-3:
        print("KERNEL_OK")
    else:
        print(f"MISMATCH max_abs_err={err}")
</pallas_src>

<mosaic_0001>
module attributes {stable_mosaic.version = 11 : i64} {
  func.func @tdfl_kernel(%arg0: i32, %arg1: memref<1x8x128xf32, #tpu.memory_space<vmem>>, %arg2: memref<128x8xf32, #tpu.memory_space<vmem>>, %arg3: memref<8x128xf32, #tpu.memory_space<vmem>>, %arg4: memref<8x16xf32, #tpu.memory_space<vmem>>, %arg5: memref<1x16xf32, #tpu.memory_space<vmem>>, %arg6: memref<1x16xf32, #tpu.memory_space<vmem>>, %arg7: memref<16x3xf32, #tpu.memory_space<vmem>>, %arg8: memref<3x8x8xf32, #tpu.memory_space<vmem>>, %arg9: memref<3x2x8xf32, #tpu.memory_space<vmem>>, %arg10: memref<2x1xf32, #tpu.memory_space<vmem>>, %arg11: memref<2x1xf32, #tpu.memory_space<vmem>>, %arg12: memref<8x2xf32, #tpu.memory_space<vmem>>, %arg13: memref<1x8x128xf32, #tpu.memory_space<vmem>>) attributes {dimension_semantics = [#tpu.dimension_semantics<parallel>], iteration_bounds = array<i64: 2>, scalar_prefetch = 0 : i64, scratch_operands = 0 : i64, tpu.core_type = #tpu.core_type<tc>, window_params = [{transform_indices = @transform_0, window_bounds = array<i64: 1, 8, 128>}, {pipeline_mode = #tpu.pipeline_mode<synchronous>, transform_indices = @transform_1, window_bounds = array<i64: 128, 8>}, {pipeline_mode = #tpu.pipeline_mode<synchronous>, transform_indices = @transform_2, window_bounds = array<i64: 8, 128>}, {pipeline_mode = #tpu.pipeline_mode<synchronous>, transform_indices = @transform_3, window_bounds = array<i64: 8, 16>}, {pipeline_mode = #tpu.pipeline_mode<synchronous>, transform_indices = @transform_4, window_bounds = array<i64: 1, 16>}, {pipeline_mode = #tpu.pipeline_mode<synchronous>, transform_indices = @transform_5, window_bounds = array<i64: 1, 16>}, {pipeline_mode = #tpu.pipeline_mode<synchronous>, transform_indices = @transform_6, window_bounds = array<i64: 16, 3>}, {pipeline_mode = #tpu.pipeline_mode<synchronous>, transform_indices = @transform_7, window_bounds = array<i64: 3, 8, 8>}, {pipeline_mode = #tpu.pipeline_mode<synchronous>, transform_indices = @transform_8, window_bounds = array<i64: 3, 2, 8>}, {pipeline_mode = #tpu.pipeline_mode<synchronous>, transform_indices = @transform_9, window_bounds = array<i64: 2, 1>}, {pipeline_mode = #tpu.pipeline_mode<synchronous>, transform_indices = @transform_10, window_bounds = array<i64: 2, 1>}, {pipeline_mode = #tpu.pipeline_mode<synchronous>, transform_indices = @transform_11, window_bounds = array<i64: 8, 2>}, {transform_indices = @transform_12, window_bounds = array<i64: 1, 8, 128>}]} {
    %c0 = arith.constant 0 : index
    %c0_0 = arith.constant 0 : index
    %c0_1 = arith.constant 0 : index
    %0 = vector.load %arg1[%c0, %c0_0, %c0_1] : memref<1x8x128xf32, #tpu.memory_space<vmem>>, vector<1x8x128xf32>
    %1 = vector.shape_cast %0 : vector<1x8x128xf32> to vector<8x128xf32>
    %c0_2 = arith.constant 0 : index
    %c0_3 = arith.constant 0 : index
    %2 = vector.load %arg2[%c0_2, %c0_3] : memref<128x8xf32, #tpu.memory_space<vmem>>, vector<128x8xf32>
    %cst = arith.constant dense<0.000000e+00> : vector<8x8xf32>
    %3 = tpu.matmul %1, %2, %cst {dimension_numbers = #tpu.dot_dimension_numbers<[1], [0], [0], [1], [0, 0, 1, 1], [], []>} : vector<8x128xf32>, vector<128x8xf32>, vector<8x8xf32> -> vector<8x8xf32>
    %c0_4 = arith.constant 0 : index
    %c0_5 = arith.constant 0 : index
    %4 = vector.load %arg4[%c0_4, %c0_5] : memref<8x16xf32, #tpu.memory_space<vmem>>, vector<8x16xf32>
    %cst_6 = arith.constant dense<0.000000e+00> : vector<8x16xf32>
    %5 = tpu.matmul %3, %4, %cst_6 {dimension_numbers = #tpu.dot_dimension_numbers<[1], [0], [0], [1], [0, 0, 1, 1], [], []>} : vector<8x8xf32>, vector<8x16xf32>, vector<8x16xf32> -> vector<8x16xf32>
    %c0_7 = arith.constant 0 : index
    %c0_8 = arith.constant 0 : index
    %6 = vector.load %arg5[%c0_7, %c0_8] : memref<1x16xf32, #tpu.memory_space<vmem>>, vector<1x16xf32>
    %7 = vector.broadcast %6 : vector<1x16xf32> to vector<8x16xf32>
    %8 = arith.mulf %5, %7 : vector<8x16xf32>
    %c0_9 = arith.constant 0 : index
    %c0_10 = arith.constant 0 : index
    %9 = vector.load %arg6[%c0_9, %c0_10] : memref<1x16xf32, #tpu.memory_space<vmem>>, vector<1x16xf32>
    %10 = vector.broadcast %9 : vector<1x16xf32> to vector<8x16xf32>
    %11 = arith.addf %8, %10 : vector<8x16xf32>
    %cst_11 = arith.constant 0.000000e+00 : f32
    %12 = vector.broadcast %cst_11 : f32 to vector<8x16xf32>
    %13 = arith.maximumf %11, %12 : vector<8x16xf32>
    %c0_12 = arith.constant 0 : index
    %c0_13 = arith.constant 0 : index
    %14 = vector.load %arg7[%c0_12, %c0_13] : memref<16x3xf32, #tpu.memory_space<vmem>>, vector<16x3xf32>
    %cst_14 = arith.constant dense<0.000000e+00> : vector<8x3xf32>
    %15 = tpu.matmul %13, %14, %cst_14 {dimension_numbers = #tpu.dot_dimension_numbers<[1], [0], [0], [1], [0, 0, 1, 1], [], []>} : vector<8x16xf32>, vector<16x3xf32>, vector<8x3xf32> -> vector<8x3xf32>
    %cst_15 = arith.constant dense<0xFF800000> : vector<8xf32>
    %16 = vector.multi_reduction <maximumf>, %15, %cst_15 [1] : vector<8x3xf32> to vector<8xf32>
    %17 = vector.shape_cast %16 : vector<8xf32> to vector<8x1xf32>
    %18 = vector.broadcast %17 : vector<8x1xf32> to vector<8x3xf32>
    %19 = arith.subf %15, %18 : vector<8x3xf32>
    %20 = math.exp %19 : vector<8x3xf32>
    %cst_16 = arith.constant dense<0.000000e+00> : vector<8xf32>
    %21 = vector.multi_reduction <add>, %20, %cst_16 [1] : vector<8x3xf32> to vector<8xf32>
    %22 = vector.shape_cast %21 : vector<8xf32> to vector<8x1xf32>
    %23 = vector.broadcast %22 : vector<8x1xf32> to vector<8x3xf32>
    %24 = arith.divf %20, %23 : vector<8x3xf32>
    %cst_17 = arith.constant 0.000000e+00 : f32
    %25 = vector.broadcast %cst_17 : f32 to vector<2x8xf32>
    %c0_18 = arith.constant 0 : index
    %c0_19 = arith.constant 0 : index
    %c0_20 = arith.constant 0 : index
    %26 = vector.load %arg8[%c0_18, %c0_19, %c0_20] : memref<3x8x8xf32, #tpu.memory_space<vmem>>, vector<1x8x8xf32>
    %27 = vector.shape_cast %26 : vector<1x8x8xf32> to vector<8x8xf32>
    %cst_21 = arith.constant dense<0.000000e+00> : vector<8x8xf32>
    %28 = tpu.matmul %3, %27, %cst_21 {dimension_numbers = #tpu.dot_dimension_numbers<[1], [0], [0], [1], [0, 0, 1, 1], [], []>} : vector<8x8xf32>, vector<8x8xf32>, vector<8x8xf32> -> vector<8x8xf32>
    %c0_22 = arith.constant 0 : index
    %c0_23 = arith.constant 0 : index
    %c0_24 = arith.constant 0 : index
    %29 = vector.load %arg9[%c0_22, %c0_23, %c0_24] : memref<3x2x8xf32, #tpu.memory_space<vmem>>, vector<1x2x8xf32>
    %30 = vector.shape_cast %29 : vector<1x2x8xf32> to vector<2x8xf32>
    %cst_25 = arith.constant dense<0.000000e+00> : vector<2x8xf32>
    %31 = tpu.matmul %30, %28, %cst_25 {dimension_numbers = #tpu.dot_dimension_numbers<[1], [0], [0], [1], [0, 0, 1, 1], [], []>} : vector<2x8xf32>, vector<8x8xf32>, vector<2x8xf32> -> vector<2x8xf32>
    %32 = arith.addf %25, %31 : vector<2x8xf32>
    %c1 = arith.constant 1 : index
    %c0_26 = arith.constant 0 : index
    %c0_27 = arith.constant 0 : index
    %33 = vector.load %arg8[%c1, %c0_26, %c0_27] : memref<3x8x8xf32, #tpu.memory_space<vmem>>, vector<1x8x8xf32>
    %34 = vector.shape_cast %33 : vector<1x8x8xf32> to vector<8x8xf32>
    %cst_28 = arith.constant dense<0.000000e+00> : vector<8x8xf32>
    %35 = tpu.matmul %3, %34, %cst_28 {dimension_numbers = #tpu.dot_dimension_numbers<[1], [0], [0], [1], [0, 0, 1, 1], [], []>} : vector<8x8xf32>, vector<8x8xf32>, vector<8x8xf32> -> vector<8x8xf32>
    %c1_29 = arith.constant 1 : index
    %c0_30 = arith.constant 0 : index
    %c0_31 = arith.constant 0 : index
    %36 = vector.load %arg9[%c1_29, %c0_30, %c0_31] : memref<3x2x8xf32, #tpu.memory_space<vmem>>, vector<1x2x8xf32>
    %37 = vector.shape_cast %36 : vector<1x2x8xf32> to vector<2x8xf32>
    %cst_32 = arith.constant dense<0.000000e+00> : vector<2x8xf32>
    %38 = tpu.matmul %37, %35, %cst_32 {dimension_numbers = #tpu.dot_dimension_numbers<[1], [0], [0], [1], [0, 0, 1, 1], [], []>} : vector<2x8xf32>, vector<8x8xf32>, vector<2x8xf32> -> vector<2x8xf32>
    %39 = arith.addf %32, %38 : vector<2x8xf32>
    %c2 = arith.constant 2 : index
    %c0_33 = arith.constant 0 : index
    %c0_34 = arith.constant 0 : index
    %40 = vector.load %arg8[%c2, %c0_33, %c0_34] : memref<3x8x8xf32, #tpu.memory_space<vmem>>, vector<1x8x8xf32>
    %41 = vector.shape_cast %40 : vector<1x8x8xf32> to vector<8x8xf32>
    %cst_35 = arith.constant dense<0.000000e+00> : vector<8x8xf32>
    %42 = tpu.matmul %3, %41, %cst_35 {dimension_numbers = #tpu.dot_dimension_numbers<[1], [0], [0], [1], [0, 0, 1, 1], [], []>} : vector<8x8xf32>, vector<8x8xf32>, vector<8x8xf32> -> vector<8x8xf32>
    %c2_36 = arith.constant 2 : index
    %c0_37 = arith.constant 0 : index
    %c0_38 = arith.constant 0 : index
    %43 = vector.load %arg9[%c2_36, %c0_37, %c0_38] : memref<3x2x8xf32, #tpu.memory_space<vmem>>, vector<1x2x8xf32>
    %44 = vector.shape_cast %43 : vector<1x2x8xf32> to vector<2x8xf32>
    %cst_39 = arith.constant dense<0.000000e+00> : vector<2x8xf32>
    %45 = tpu.matmul %44, %42, %cst_39 {dimension_numbers = #tpu.dot_dimension_numbers<[1], [0], [0], [1], [0, 0, 1, 1], [], []>} : vector<2x8xf32>, vector<8x8xf32>, vector<2x8xf32> -> vector<2x8xf32>
    %46 = arith.addf %39, %45 : vector<2x8xf32>
    %c0_40 = arith.constant 0 : index
    %c0_41 = arith.constant 0 : index
    %47 = vector.load %arg10[%c0_40, %c0_41] : memref<2x1xf32, #tpu.memory_space<vmem>>, vector<2x1xf32>
    %48 = vector.broadcast %47 : vector<2x1xf32> to vector<2x8xf32>
    %49 = arith.mulf %46, %48 : vector<2x8xf32>
    %c0_42 = arith.constant 0 : index
    %c0_43 = arith.constant 0 : index
    %50 = vector.load %arg11[%c0_42, %c0_43] : memref<2x1xf32, #tpu.memory_space<vmem>>, vector<2x1xf32>
    %51 = vector.broadcast %50 : vector<2x1xf32> to vector<2x8xf32>
    %52 = arith.addf %49, %51 : vector<2x8xf32>
    %cst_44 = arith.constant 0.000000e+00 : f32
    %53 = vector.broadcast %cst_44 : f32 to vector<2x8xf32>
    %54 = arith.maximumf %52, %53 : vector<2x8xf32>
    %c0_45 = arith.constant 0 : index
    %c0_46 = arith.constant 0 : index
    %55 = vector.load %arg12[%c0_45, %c0_46] : memref<8x2xf32, #tpu.memory_space<vmem>>, vector<8x2xf32>
    %cst_47 = arith.constant dense<0.000000e+00> : vector<8x8xf32>
    %56 = tpu.matmul %55, %54, %cst_47 {dimension_numbers = #tpu.dot_dimension_numbers<[1], [0], [0], [1], [0, 0, 1, 1], [], []>} : vector<8x2xf32>, vector<2x8xf32>, vector<8x8xf32> -> vector<8x8xf32>
    %57 = arith.negf %56 : vector<8x8xf32>
    %58 = math.exp %57 : vector<8x8xf32>
    %cst_48 = arith.constant 1.000000e+00 : f32
    %59 = vector.broadcast %cst_48 : f32 to vector<8x8xf32>
    %60 = arith.addf %59, %58 : vector<8x8xf32>
    %61 = arith.divf %59, %60 : vector<8x8xf32>
    %c0_49 = arith.constant 0 : index
    %c0_50 = arith.constant 0 : index
    %62 = vector.load %arg3[%c0_49, %c0_50] : memref<8x128xf32, #tpu.memory_space<vmem>>, vector<8x128xf32>
    %cst_51 = arith.constant dense<0.000000e+00> : vector<8x128xf32>
    %63 = tpu.matmul %61, %62, %cst_51 {dimension_numbers = #tpu.dot_dimension_numbers<[1], [0], [0], [1], [0, 0, 1, 1], [], []>} : vector<8x8xf32>, vector<8x128xf32>, vector<8x128xf32> -> vector<8x128xf32>
    %64 = arith.mulf %1, %63 : vector<8x128xf32>
    %cst_52 = arith.constant 0.000000e+00 : f32
    %65 = vector.broadcast %cst_52 : f32 to vector<8x16xf32>
    %66 = vector.extract_strided_slice %64 {offsets = [0, 0], sizes = [8, 112], strides = [1, 1]} : vector<8x128xf32> to vector<8x112xf32>
    %67 = tpu.concatenate %65, %66 in 1 : vector<8x16xf32>, vector<8x112xf32> -> vector<8x128xf32>
    %68 = vector.extract_strided_slice %24 {offsets = [0, 0], sizes = [8, 1], strides = [1, 1]} : vector<8x3xf32> to vector<8x1xf32>
    %69 = vector.shape_cast %68 : vector<8x1xf32> to vector<8xf32>
    %70 = vector.shape_cast %69 : vector<8xf32> to vector<8x1xf32>
    %71 = vector.broadcast %70 : vector<8x1xf32> to vector<8x128xf32>
    %72 = arith.mulf %71, %67 : vector<8x128xf32>
    %73 = arith.addf %1, %72 : vector<8x128xf32>
    %74 = vector.extract_strided_slice %24 {offsets = [0, 1], sizes = [8, 1], strides = [1, 1]} : vector<8x3xf32> to vector<8x1xf32>
    %75 = vector.shape_cast %74 : vector<8x1xf32> to vector<8xf32>
    %76 = vector.shape_cast %75 : vector<8xf32> to vector<8x1xf32>
    %77 = vector.broadcast %76 : vector<8x1xf32> to vector<8x128xf32>
    %78 = arith.mulf %77, %64 : vector<8x128xf32>
    %79 = arith.addf %73, %78 : vector<8x128xf32>
    %80 = vector.extract_strided_slice %64 {offsets = [0, 16], sizes = [8, 112], strides = [1, 1]} : vector<8x128xf32> to vector<8x112xf32>
    %cst_53 = arith.constant 0.000000e+00 : f32
    %81 = vector.broadcast %cst_53 : f32 to vector<8x16xf32>
    %82 = tpu.concatenate %80, %81 in 1 : vector<8x112xf32>, vector<8x16xf32> -> vector<8x128xf32>
    %83 = vector.extract_strided_slice %24 {offsets = [0, 2], sizes = [8, 1], strides = [1, 1]} : vector<8x3xf32> to vector<8x1xf32>
    %84 = vector.shape_cast %83 : vector<8x1xf32> to vector<8xf32>
    %85 = vector.shape_cast %84 : vector<8xf32> to vector<8x1xf32>
    %86 = vector.broadcast %85 : vector<8x1xf32> to vector<8x128xf32>
    %87 = arith.mulf %86, %82 : vector<8x128xf32>
    %88 = arith.addf %79, %87 : vector<8x128xf32>
    %c0_54 = arith.constant 0 : index
    %c0_55 = arith.constant 0 : index
    %c0_56 = arith.constant 0 : index
    %89 = vector.load %arg13[%c0_54, %c0_55, %c0_56] : memref<1x8x128xf32, #tpu.memory_space<vmem>>, vector<1x8x128xf32>
    %90 = vector.shape_cast %89 : vector<1x8x128xf32> to vector<8x128xf32>
    %91 = vector.shape_cast %88 : vector<8x128xf32> to vector<1x8x128xf32>
    tpu.vector_store %arg13[%c0_54, %c0_55, %c0_56], %91 {strides = array<i32>} : memref<1x8x128xf32, #tpu.memory_space<vmem>>, vector<1x8x128xf32>,
    return
  }
  func.func @transform_0(%arg0: i32) -> (i32, i32, i32) {
    %c0_i32 = arith.constant 0 : i32
    %c0_i32_0 = arith.constant 0 : i32
    %c0_i32_1 = arith.constant 0 : i32
    return %arg0, %c0_i32, %c0_i32_0 : i32, i32, i32
  }
  func.func @transform_1(%arg0: i32) -> (i32, i32) {
    %c0_i32 = arith.constant 0 : i32
    %c0_i32_0 = arith.constant 0 : i32
    %c0_i32_1 = arith.constant 0 : i32
    return %c0_i32, %c0_i32_0 : i32, i32
  }
  func.func @transform_2(%arg0: i32) -> (i32, i32) {
    %c0_i32 = arith.constant 0 : i32
    %c0_i32_0 = arith.constant 0 : i32
    %c0_i32_1 = arith.constant 0 : i32
    return %c0_i32, %c0_i32_0 : i32, i32
  }
  func.func @transform_3(%arg0: i32) -> (i32, i32) {
    %c0_i32 = arith.constant 0 : i32
    %c0_i32_0 = arith.constant 0 : i32
    %c0_i32_1 = arith.constant 0 : i32
    return %c0_i32, %c0_i32_0 : i32, i32
  }
  func.func @transform_4(%arg0: i32) -> (i32, i32) {
    %c0_i32 = arith.constant 0 : i32
    %c0_i32_0 = arith.constant 0 : i32
    %c0_i32_1 = arith.constant 0 : i32
    return %c0_i32, %c0_i32_0 : i32, i32
  }
  func.func @transform_5(%arg0: i32) -> (i32, i32) {
    %c0_i32 = arith.constant 0 : i32
    %c0_i32_0 = arith.constant 0 : i32
    %c0_i32_1 = arith.constant 0 : i32
    return %c0_i32, %c0_i32_0 : i32, i32
  }
  func.func @transform_6(%arg0: i32) -> (i32, i32) {
    %c0_i32 = arith.constant 0 : i32
    %c0_i32_0 = arith.constant 0 : i32
    %c0_i32_1 = arith.constant 0 : i32
    return %c0_i32, %c0_i32_0 : i32, i32
  }
  func.func @transform_7(%arg0: i32) -> (i32, i32, i32) {
    %c0_i32 = arith.constant 0 : i32
    %c0_i32_0 = arith.constant 0 : i32
    %c0_i32_1 = arith.constant 0 : i32
    %c0_i32_2 = arith.constant 0 : i32
    return %c0_i32, %c0_i32_0, %c0_i32_1 : i32, i32, i32
  }
  func.func @transform_8(%arg0: i32) -> (i32, i32, i32) {
    %c0_i32 = arith.constant 0 : i32
    %c0_i32_0 = arith.constant 0 : i32
    %c0_i32_1 = arith.constant 0 : i32
    %c0_i32_2 = arith.constant 0 : i32
    return %c0_i32, %c0_i32_0, %c0_i32_1 : i32, i32, i32
  }
  func.func @transform_9(%arg0: i32) -> (i32, i32) {
    %c0_i32 = arith.constant 0 : i32
    %c0_i32_0 = arith.constant 0 : i32
    %c0_i32_1 = arith.constant 0 : i32
    return %c0_i32, %c0_i32_0 : i32, i32
  }
  func.func @transform_10(%arg0: i32) -> (i32, i32) {
    %c0_i32 = arith.constant 0 : i32
    %c0_i32_0 = arith.constant 0 : i32
    %c0_i32_1 = arith.constant 0 : i32
    return %c0_i32, %c0_i32_0 : i32, i32
  }
  func.func @transform_11(%arg0: i32) -> (i32, i32) {
    %c0_i32 = arith.constant 0 : i32
    %c0_i32_0 = arith.constant 0 : i32
    %c0_i32_1 = arith.constant 0 : i32
    return %c0_i32, %c0_i32_0 : i32, i32
  }
  func.func @transform_12(%arg0: i32) -> (i32, i32, i32) {
    %c0_i32 = arith.constant 0 : i32
    %c0_i32_0 = arith.constant 0 : i32
    %c0_i32_1 = arith.constant 0 : i32
    return %arg0, %c0_i32, %c0_i32_0 : i32, i32, i32
  }
}

</mosaic_0001>

<bundles_post_ra>
// kernel: tpu_custom_call.1
= control target key start
LH: loop header
LB: loop body
LE: loop exit
PB: predicated region body
PF: predicated region fallthrough
CT: control target
= control target key end

     0   :  { %17 = vsyncpa [#allocation3], 0  ;;  %s1280_s0 = inlined_call_operand.vmem [shape: f32[2,8,128], index: 0, kind: input, shape index: {}]   ;;  %s1281_s1 = inlined_call_operand.vmem [shape: f32[128,8], index: 1, kind: input, shape index: {}]   ;;  %s1282_s2 = inlined_call_operand.vmem [shape: f32[8,128], index: 2, kind: input, shape index: {}]   ;;  %s1283_s3 = inlined_call_operand.vmem [shape: f32[8,16], index: 3, kind: input, shape index: {}]   ;;  %s1284_s4 = inlined_call_operand.vmem [shape: f32[1,16], index: 4, kind: input, shape index: {}]   ;;  %s1285_s5 = inlined_call_operand.vmem [shape: f32[1,16], index: 5, kind: input, shape index: {}]   ;;  %s1286_s6 = inlined_call_operand.vmem [shape: f32[16,3], index: 6, kind: input, shape index: {}]   ;;  %s1287_s7 = inlined_call_operand.vmem [shape: f32[3,8,8], index: 7, kind: input, shape index: {}]   ;;  %s1288_s8 = inlined_call_operand.vmem [shape: f32[3,2,8], index: 8, kind: input, shape index: {}]   ;;  %s1289_s9 = inlined_call_operand.vmem [shape: f32[2,1], index: 9, kind: input, shape index: {}]   ;;  %s1290_s10 = inlined_call_operand.vmem [shape: f32[2,1], index: 10, kind: input, shape index: {}]   ;;  %s1291_s11 = inlined_call_operand.vmem [shape: f32[8,2], index: 11, kind: input, shape index: {}]   ;;  %s1292_s12 = inlined_call_operand.hbm [shape: f32[2,8,128], index: 12, kind: output, shape index: {}]  }
   0x1   :  { %19 = vsyncpa [#allocation3 + $0x1], 0  ;;  %s1085_s21 = smov 0   ;;  %s1087_s22 = smov 0  }
   0x2   :  { %s1089_s23 = smov 0   ;;  %s1091_s24 = smov 0  }
   0x3 LB: > { %1297 = sst [smem:[#allocation5_spill]] %s1009_s23  ;;  %s1106_s25 = sadd.s32 4294967295, %s1013_s24   ;;  %s1013_s24 = sphi %s1091_s24, %s1304_s24   ;;  %s1009_s23 = sphi %s1089_s23, %s1306_s23   ;;  %s1005_s22 = sphi %s1087_s22, %s1308_s22   ;;  %s1001_s21 = sphi %s1085_s21, %s1307_s21  }
   0x4   : > { %s866_s26 = sadd.s32 4294967294, %s1013_s24   ;;  %s1110_s27 = sadd.s32 1, %s1013_s24  }
   0x5   : > { %1298 = sst [smem:[#allocation6_spill]] %s1110_s27  ;;  %s289_s28 = sadd.s32 1, %s1009_s23 }
   0x6   : > { %s286_s29 = ssub.s32 %s1013_s24, %s1110_s27  ;;  %p299_p0 = scmp.ne.s32.totalorder %s1009_s23, %s1005_s22 }
   0x7   : > { %p287_p1 = scmp.eq.s32.totalorder %s286_s29, 0  ;;  %p300_p2 = scmp.eq.s32.totalorder %s1106_s25, 1 }
   0x8   : > { %p305_p3 = scmp.ne.s32.totalorder %s1005_s22, %s1001_s21  ;;  %p306_p4 = scmp.eq.s32.totalorder %s866_s26, 1 }
   0x9   : > { %s1121_s30 = scalar_select %p287_p1, %s1009_s23, %s289_s28  }
   0xa   : > { %p1123_p5 = por %p300_p2, %p299_p0  ;;  %p1127_p6 = por %p306_p4, %p305_p3 }
   0xb   : > { %1299 = sst [smem:[#allocation7_spill]] %s1121_s30  ;;  %p869_p7 = scmp.ge.s32.totalorder %s1013_s24, 1 }
   0xc   : > { %s1301_s14 = scalar_select %p1127_p6, 1, 0 }
   0xd   : > { %p364_p8 = scmp.lt.s32.totalorder %s1013_s24, 3 }
   0xe   : > { %1302 = sst [smem:[#allocation8_spill]] %s1301_s14 }
   0xf   : > { %p365_p9 = pnand %p869_p7, %p364_p8 }
  0x10   : > { %p405_p10 = scmp.lt.s32.totalorder (!%p365_p9), %s1106_s25, 1  ;;  %s1018_s23 = smov (!%p365_p9), 112  }
  0x11   : > { %368 = sbr.rel (%p365_p9) target bundleno = 875 (0x36b), region = 68  ;;  %s1019_s27 = smov (!%p365_p9), 16  }
  0x12   : > { %s402_s14 = sand.u32 (!%p365_p9), 1, %s1005_s22   ;;  %s889_s29 = sshll.u32 (!%p365_p9), %s1106_s25, 3 }
  0x16   : > { %v425_v0 = vld [vmem:[%s1281_s1 + $0x78] sm:$0xff]  ;;  %v424_v1 = vld [vmem:[%s1281_s1 + $0x70] sm:$0xff]  ;;  %v423_v2 = vld [vmem:[%s1281_s1 + $0x68] sm:$0xff]  ;;  %s406_s17 = scalar_select %p405_p10, %s1106_s25, 1  ;;  %vm447_vm0 = vcmask 64512   ;;  %v1015_v25 = vmov 0  }
  0x17   : > { %426 = vmatpush.msra.mxu0 %v425_v0  ;;  %v422_v3 = vld [vmem:[%s1281_s1 + $0x60] sm:$0xff]  ;;  %v421_v4 = vld [vmem:[%s1281_s1 + $0x58] sm:$0xff]  ;;  %v420_v5 = vld [vmem:[%s1281_s1 + $0x50] sm:$0xff]  ;;  %936 = vset.pattern.permute.xlu0 %v1015_v25  ;;  %vm484_vm1 = vcmask 130048   ;;  %vm508_vm2 = vcmask 23552   ;;  %vm693_vm3 = vcmask 1041408  }
  0x18   : > { %v419_v6 = vld [vmem:[%s1281_s1 + $0x48] sm:$0xff]  ;;  %v418_v7 = vld [vmem:[%s1281_s1 + $0x40] sm:$0xff]  ;;  %v417_v8 = vld [vmem:[%s1281_s1 + $0x38] sm:$0xff]  ;;  %s871_s30 = sshll.u32 %s406_s17, 3  ;;  %937 = vset.pattern.permute.xlu2 %v1015_v25  ;;  %vm689_vm4 = vcmask 15360   ;;  %vm782_vm13 = vcmask 916480  }
  0x19   : > { %427 = vmatpush.msra.mxu0 %v424_v1  ;;  %v416_v9 = vld [vmem:[%s1281_s1 + $0x30] sm:$0xff]  ;;  %v415_v10 = vld [vmem:[%s1281_s1 + $0x28] sm:$0xff]  ;;  %v414_v11 = vld [vmem:[%s1281_s1 + $0x20] sm:$0xff]  ;;  %s408_s18 = scalar_lea.vmem %s1280_s0, %s871_s30  ;;  %s870_s30 = sshll.u32 %s402_s14, 3 }
  0x1a   : > { %v413_v12 = vld [vmem:[%s1281_s1 + $0x18] sm:$0xff]  ;;  %v412_v13 = vld [vmem:[%s1281_s1 + $0x10] sm:$0xff]  ;;  %v411_v14 = vld [vmem:[%s1281_s1 + $0x8] sm:$0xff]  ;;  %s404_s19 = scalar_lea.vmem [#allocation2], %s870_s30  ;;  %s792_s25 = scalar_lea.sflag [#allocation3], %s402_s14 }
  0x1b   : > { %428 = vmatpush.msra.mxu0 %v423_v2  ;;  %v410_v15 = vld [vmem:[%s1281_s1] sm:$0xff]  ;;  %v875_v19 = vld [vmem:[%s1287_s7 + $0x8] sm:$0xff]  ;;  %v880_v20 = vld [vmem:[%s1287_s7 + $0x10] sm:$0xff]  ;;  %s804_s17 = sshll.u32 %s404_s19, 4  ;;  %s971_s30 = scalar_lea.hbm %s1292_s12, 16  ;;  %s805_s17 = int_to_ptr.vmem [resolvable:$true] %s804_s17 }
  0x1c   : > { %v1186_v16 = vld [vmem:[%s408_s18] sm:$0xff]  ;;  %v483_v22 = vld [vmem:[%s1286_s6 + $0x8] sm:$0xff]  ;;  %s802_s18 = scalar_lea.hbm %s1292_s12, %s889_s29 }
  0x1d   : > { %429 = vmatpush.msra.mxu0 %v422_v3  ;;  %v446_v17 = vld [vmem:[%s1283_s3] sm:$0xff]  ;;  %502 = vmatpush.msra.mxu2 %v483_v22  ;;  %v1017_v22 = vmov 2   ;;  %s806_s20 = sshll.u32 %s802_s18, 4  ;;  %s807_s20 = int_to_ptr.hbm [resolvable:$true] %s806_s20 }
  0x1e   : > { %v533_v18 = vld [vmem:[%s1287_s7] sm:$0xff]  ;;  %466 = vmatpush.msra.mxu1 %v446_v17  ;;  %s965_s26 = sshra.s32 %s807_s20, 4  ;;  %s966_s26 = int_to_ptr.hbm [resolvable:$true] %s965_s26 }
  0x1f   : > { %430 = vmatpush.msra.mxu0 %v421_v4  ;;  %549 = vmatpush.msra.mxu3 %v533_v18  ;;  %v482_v23 = vld [vmem:[%s1286_s6] sm:$0xff]  ;;  %s967_s28 = scalar_lea.hbm %s966_s26, 8  ;;  %p972_p0 = scmp.lt.s32.totalorder %s966_s26, %s1292_s12 }
  0x20   : > { %572 = vmatpush.msrb.mxu1 %v875_v19  ;;  %503 = vmatpush.msra.mxu2 %v482_v23  ;;  %v673_v24 = vld [vmem:[%s1289_s9] sm:$0x3]  ;;  %v877_v34 = vld [vmem:[%s1288_s8 + $0x2] sm:$0x3]  ;;  %v882_v37 = vld [vmem:[%s1288_s8 + $0x4] sm:$0x3]  ;;  %p968_p11 = scmp.ne.s32.totalorder %s966_s26, %s967_s28  ;;  %p973_p1 = scmp.lt.s32.totalorder %s971_s30, %s967_s28 }
  0x21   : > { %431 = vmatpush.msra.mxu0 %v420_v5  ;;  %676 = vperm.xlu0 %936, %v673_v24   ;;  %v680_v26 = vld [vmem:[%s1290_s10] sm:$0x3] }
  0x22   : > { %v941_v27 = vld [vmem:[%s1284_s4] ss:$0 sm:$0xff]  ;;  %p969_p12 = pnand %p968_p11, %p1123_p5  ;;  %p974_p2 = por %p973_p1, %p972_p0 }
  0x23   : > { %432 = vmatpush.msra.mxu0 %v419_v6  ;;  %v942_v28 = vld [vmem:[%s1285_s5] ss:$0 sm:$0xff] }
  0x24   : > { %v554_v36 = vld [vmem:[%s1288_s8] sm:$0x3]  ;;  %p970_p13 = pneg %p969_p12 }
  0x25   : > { %433 = vmatpush.msra.mxu0 %v418_v7  ;;  %v688_v51 = vld [vmem:[%s1291_s11] sm:$0xff] }
  0x26   : > { %v736_v57 = vld [vmem:[%s1282_s2] sm:$0xff]  ;;  %p975_p3 = pnand %p974_p2, %p970_p13 }
  0x27   : > { %434 = vmatpush.msra.mxu0 %v417_v8  ;;  %v1016_v8 = vmov 1  }
  0x29   : > { %435 = vmatpush.msra.mxu0 %v416_v9  ;;  %683 = vperm.xlu0 %936, %v680_v26  }
  0x2b   : > { %436 = vmatpush.msra.mxu0 %v415_v10 }
  0x2d   : > { %437 = vmatpush.msra.mxu0 %v414_v11 }
  0x2f   : > { %438 = vmatpush.msra.mxu0 %v413_v12 }
  0x31   : > { %439 = vmatpush.msra.mxu0 %v412_v13  ;;  %938 = vset.pattern.permute.xlu0 %v1016_v8 }
  0x33   : > { %440 = vmatpush.msra.mxu0 %v411_v14 }
  0x35   : > { %441 = vmatpush.msra.mxu0 %v410_v15 }
  0x36   : > { %442 = vmatmul.f32.vlgmr.msra.gmra.mxu0 %v1186_v16 }
  0x93   : > { %v677_v42 = vpop.permute.xlu0 %676 }
  0x9b   : > { %v684_v48 = vpop.permute.xlu0 %683 }
  0xb3   : > { %v443_v21 = vpop.f32.mrf.mxu0 }
  0xb4   : > { %872 = vmatmul.msk.f32.vlgmr.msra.gmra.mxu1 %vm447_vm0, %v443_v21  ;;  %874 = vmatmul.msk.f32.vlgmr.msra.gmra.mxu3 %vm447_vm0, %v443_v21 }
  0xb5   : > { %642 = vmatpush.msra.mxu1 %v880_v20 }
  0xbc   : > { %876 = vmatmul.msk.f32.vlgmr.msrb.gmra.mxu1 %vm447_vm0, %v443_v21 }
  0xbd   : > { %755 = vmatpush.msrb.mxu1 %v736_v57 }
  0xc4   : > { %881 = vmatmul.msk.f32.vlgmr.msra.gmra.mxu1 %vm447_vm0, %v443_v21 }
 0x131   : > { %v468_v29 = vpop.f32.mrf.mxu1 }
 0x132   : > { %v475_v30 = vmul.f32 %v941_v27, %v468_v29 }
 0x134   : > { %v480_v31 = vadd.f32 %v942_v28, %v475_v30 }
 0x136   : > { %v481_v32 = vmax.f32 %v480_v31, 0.0 }
 0x137   : > { %v551_v33 = vpop.f32.mrf.mxu3 }
 0x138   : > { %873 = vmatmul.msk.f32.vlgmr.msra.gmra.mxu2 %vm484_vm1, %v481_v32 }
 0x139   : > { %620 = vmatpush.msrb.mxu2 %v551_v33  ;;  %v574_v35 = vpop.f32.mrf.mxu1 }
 0x13a   : > { %597 = vmatpush.msrb.mxu3 %v574_v35 }
 0x13b   : > { %878 = vmatmul.msk.f32.vlgmr.msrb.gmra.mxu3 %vm447_vm0, %v877_v34 }
 0x140   : > { %879 = vmatmul.msk.f32.vlgmr.msrb.gmra.mxu2 %vm447_vm0, %v554_v36 }
 0x141   : > { %v644_v38 = vpop.f32.mrf.mxu1 }
 0x142   : > { %667 = vmatpush.msra.mxu3 %v644_v38 }
 0x143   : > { %883 = vmatmul.msk.f32.vlgmr.msra.gmra.mxu3 %vm447_vm0, %v882_v37 }
 0x1bb   : > { %v505_v39 = vpop.f32.mrf.mxu2 }
 0x1bc   : > { %v509_v40 = vsel %vm508_vm2, %v505_v39, -inf }
 0x1bd   : > { %510 = vmax.xlane.f32.xlu1 %v509_v40 }
 0x1be   : > { %v599_v41 = vpop.f32.mrf.mxu3 }
 0x1c3   : > { %v622_v43 = vpop.f32.mrf.mxu2 }
 0x1c4   : > { %v623_v44 = vadd.f32 %v622_v43, %v599_v41 }
 0x1c6   : > { %v669_v45 = vpop.f32.mrf.mxu3 }
 0x1c7   : > { %v672_v46 = vadd.f32 %v669_v45, %v623_v44 }
 0x1c9   : > { %v679_v47 = vmul.f32 %v677_v42, %v672_v46 }
 0x1cb   : > { %v686_v49 = vadd.f32 %v684_v48, %v679_v47 }
 0x1cd   : > { %v687_v50 = vmax.f32 %v686_v49, 0.0 }
 0x1cf   : > { %884 = vmatpush.msk.msra.mxu2 %vm693_vm3, %v687_v50 }
 0x1d0   : > { %885 = vmatmul.msk.f32.vlgmr.msra.gmra.mxu2 %vm689_vm4, %v688_v51 }
 0x230   : > { %v511_v52 = vpop.xlane.xlu1 %510 }
 0x231   : > { %v512_v53 = vsub.f32 %v505_v39, %v511_v52 }
 0x233   : > { %v513_v54 = vmul.f32 1.442695, %v512_v53 }
 0x235   : > { %943 = vpow2.f32 %v513_v54 }
 0x23b   : > { %v944_v55 = vpop.eup %943 }
 0x23c   : > { %v515_v56 = vsel %vm508_vm2, %v944_v55, 0.0 }
 0x23d   : > { %516 = vadd.xlane.f32.xlu1 %v515_v56 }
 0x253   : > { %v714_v58 = vpop.f32.mrf.mxu2 }
 0x254   : > { %v886_v59 = vmul.f32 -1.442695, %v714_v58 }
 0x256   : > { %945 = vpow2.f32 %v886_v59 }
 0x25c   : > { %v946_v60 = vpop.eup %945 }
 0x25d   : > { %v720_v61 = vadd.f32 1.0, %v946_v60 }
 0x25f   : > { %947 = vrcp.f32 %v720_v61  ;;  %v732_v1 = vand.u32 2147483648, %v720_v61  ;;  %v730_v3 = vand.u32 2147483647, %v720_v61  ;;  %vm726_vm6 = vweird.f32 %v720_v61 }
 0x261   : > { %v733_v5 = vor.u32 1.1754944e-38, %v732_v1  ;;  %vm731_vm8 = vcmp.eq.f32.partialorder %v730_v3, 8.507059e+37 }
 0x265   : > { %v948_v62 = vpop.eup %947 }
 0x266   : > { %v722_v63 = vmul.f32 %v948_v62, %v720_v61  ;;  %vm727_vm5 = vweird.f32 %v948_v62 }
 0x267   : > { %vm728_vm7 = vmor %vm726_vm6, %vm727_vm5 }
 0x268   : > { %v723_v0 = vsub.f32 1.0, %v722_v63 }
 0x26a   : > { %v724_v2 = vmul.f32 %v948_v62, %v723_v0 }
 0x26c   : > { %v725_v4 = vadd.f32 %v948_v62, %v724_v2 }
 0x26e   : > { %v729_v6 = vsel %vm728_vm7, %v948_v62, %v725_v4 }
 0x26f   : > { %v734_v7 = vsel %vm731_vm8, %v733_v5, %v729_v6 }
 0x270   : > { %887 = vmatmul.msk.f32.vlgmr.msrb.gmra.mxu1 %vm447_vm0, %v734_v7 }
 0x2b0   : > { %v517_v9 = vpop.xlane.xlu1 %516 }
 0x2b1   : > { %949 = vrcp.f32 %v517_v9  ;;  %v529_v13 = vand.u32 2147483648, %v517_v9  ;;  %v527_v15 = vand.u32 2147483647, %v517_v9  ;;  %vm523_vm10 = vweird.f32 %v517_v9 }
 0x2b3   : > { %v530_v18 = vor.u32 1.1754944e-38, %v529_v13  ;;  %vm528_vm12 = vcmp.eq.f32.partialorder %v527_v15, 8.507059e+37 }
 0x2b7   : > { %v950_v10 = vpop.eup %949 }
 0x2b8   : > { %v519_v11 = vmul.f32 %v950_v10, %v517_v9  ;;  %vm524_vm9 = vweird.f32 %v950_v10 }
 0x2b9   : > { %vm525_vm11 = vmor %vm523_vm10, %vm524_vm9 }
 0x2ba   : > { %v520_v12 = vsub.f32 1.0, %v519_v11 }
 0x2bc   : > { %v521_v14 = vmul.f32 %v950_v10, %v520_v12 }
 0x2be   : > { %v522_v17 = vadd.f32 %v950_v10, %v521_v14 }
 0x2c0   : > { %v526_v19 = vsel %vm525_vm11, %v950_v10, %v522_v17 }
 0x2c1   : > { %v531_v20 = vsel %vm528_vm12, %v530_v18, %v526_v19 }
 0x2c2   : > { %v532_v21 = vmul.f32 %v944_v55, %v531_v20 }
 0x2c4   : > { %774 = vperm.xlu0 %938, %v532_v21   ;;  %768 = vperm.xlu2 %937, %v532_v21  }
 0x2cc   : > { %939 = vset.pattern.permute.xlu2 %v1017_v22  ;;  %940 = vset.pattern.permute.xlu0 %v1017_v22 }
 0x2ed   : > { %v757_v23 = vpop.f32.mrf.mxu1 }
 0x2ee   : > { %v760_v24 = vmul.f32 %v757_v23, %v1186_v16 }
 0x2f0   : > { %779 = vrot.lane.b32.xlu1 %v760_v24, %s1018_s23  ;;  %762 = vrot.lane.b32.xlu2 %v760_v24, %s1019_s27 }
 0x2f8   : > { %785 = vperm.xlu2 %939, %v532_v21  }
 0x31e   : > { %v769_v25 = vpop.permute.xlu2 %768 }
 0x336   : > { %v775_v29 = vpop.permute.xlu0 %774 }
 0x337   : > { %v777_v31 = vmul.f32 %v775_v29, %v760_v24 }
 0x34a   : > { %v763_v26 = vpop.permute.xlu2 %762 }
 0x34b   : > { %v765_v27 = vsel %vm484_vm1, 0.0, %v763_v26 }
 0x34c   : > { %v771_v28 = vmul.f32 %v769_v25, %v765_v27 }
 0x34e   : > { %v772_v30 = vadd.f32 %v771_v28, %v1186_v16 }
 0x350   : > { %v778_v35 = vadd.f32 %v777_v31, %v772_v30 }
 0x352   : > { %v786_v33 = vpop.permute.xlu2 %785 }
 0x362   : > { %v780_v32 = vpop.permute.xlu1 %779 }
 0x363   : > { %v783_v34 = vsel %vm782_vm13, %v780_v32, 0.0 }
 0x364   : > { %v788_v36 = vmul.f32 %v786_v33, %v783_v34 }
 0x366   : > { %v789_v37 = vadd.f32 %v788_v36, %v778_v35 }
 0x368   : > { %790 = vst [vmem:[%s404_s19] sm:$0xff] %v789_v37 }
 0x369   : > { %978 = shalt.err (!%p975_p3)
}
 0x36a   : > { %892 = dma.vmem_to_hbm [thread:$0]  (%p1123_p5), %s805_s17, 128, %s807_s20, %s792_s25  }
 0x36b PF: > { %p898_p4 = scmp.ge.s32.totalorder %s1013_s24, 2  ;;  %s818_s16 = sand.u32 1, %s1001_s21  }
 0x36c   : > { %s819_s18 = scalar_lea.sflag [#allocation3], %s818_s16 }
 0x36d   : > { %p895_p7 = pnand %p898_p4, %p1127_p6 }
 0x36f   : > { %p896_p8 = pneg %p895_p7 }
 0x371   : > { %996 = dma.done.wait (%p896_p8), %s819_s18, 128  }
 0x372   : > { %998 = vsyncadd (%p896_p8), %s819_s18, 4294967168  ;;  %s1304_s24 = sld [smem:[#allocation6_spill]]  ;;  %s1307_s21 = smov %s1005_s22 }
 0x373   : > { %s1305_s19 = sld [smem:[#allocation5_spill]] }
 0x374   : > { %s1306_s23 = sld [smem:[#allocation7_spill]] }
 0x378   : > { %p22_p9 = scmp.ge.s32.totalorder %s1304_s24, 4  }
 0x379   : > { %s1308_s22 = smov %s1305_s19 }
 0x37a   :  { %24 = sbr.rel (!%p22_p9) target bundleno = 3 (0x3), region = 107 }
 0x37f   :  { %825 = vsyncpa [#allocation3], 1 }
 0x380   :  { %827 = vsyncpa [#allocation3 + $0x1], 1 }

</bundles_post_ra>
